<compile_context>
chip_gen: v6e
topology: v6e:2x2x1
jax: 0.10.0
libtpu: 0.0.40
codegen_flags: <defaults>
</compile_context>

<pallas_src>
import functools
import math

import jax
import jax.numpy as jnp
from jax.experimental import pallas as pl
from jax.experimental.pallas import tpu as pltpu


def _sincos_select_kernel(time_ref, freq2_ref, mask_ref, out_ref, *, r_fold: int):
    """dim < 128 path: r_fold batch rows folded into one lane-dense output row.

    Builds the full (TB, r_fold*dim) argument, evaluates sin and cos once each
    over the full >=128-lane width, selects per column with a precomputed 0/1
    mask and issues a single full-width store.
    """
    t = time_ref[...]          # (TB, R)  f32
    f2 = freq2_ref[...]        # (1, dim) f32 = [freq | freq]
    # Exact f32 multiplies (bit-identical to the reference math); the lane
    # concat is shift work on the XLU, off the saturating VALU slot.
    pieces = [t[:, r:r + 1] * f2 for r in range(r_fold)]
    arg = jnp.concatenate(pieces, axis=-1) if r_fold > 1 else pieces[0]
    s = jnp.sin(arg)
    c = jnp.cos(arg)
    out_ref[...] = jnp.where(mask_ref[...] > 0.5, s, c)   # one full-width store


def _sincos_concat_kernel(time_ref, freq_ref, out_ref):
    """dim >= 128 path: sin and cos each evaluated once over (TB, half_dim)."""
    arg = time_ref[...] * freq_ref[...]                    # (TB, half_dim)
    out_ref[...] = jnp.concatenate([jnp.sin(arg), jnp.cos(arg)], axis=-1)


def _choose_row_tile(bp: int, packed_dim: int) -> int:
    """Rows per block: VMEM-budgeted from dim, >=2 grid steps when possible."""
    if bp < 16:
        return bp                                  # single (full-array) block
    # Per grid step (f32 bytes): output block x2 (double-buffered) +
    # time block padded to 128 lanes x2 + ~3 blocks of sin/cos/arg temporaries.
    per_row_bytes = 4 * (5 * packed_dim + 2 * 128)
    budget = 12 * 1024 * 1024                      # fits v5e's 16 MiB default scoped VMEM
    tb = max(8, min(1024, budget // per_row_bytes))
    # Guarantee >= 2 grid steps so the "parallel" axis shards across v7x's 2 TCs.
    half = (((bp + 1) // 2) + 7) // 8 * 8
    tb = min(tb, half)
    tb -= tb % 8
    return max(tb, 8)


def sinusoidal_position_embeddings(time: jax.Array, dim: int, *, use_pallas=None) -> jax.Array:
    """time: [B] -> [B, dim] float32 (== torch cat([sin, cos], -1))."""
    assert time.ndim == 1
    assert dim % 2 == 0 and dim >= 4, "dim must be an even integer >= 4"
    B = time.shape[0]

    # Tiny outputs are launch-overhead bound in Pallas; let XLA fuse them.
    if use_pallas is None:
        use_pallas = (B * dim * 4) >= (256 * 1024)
    if not use_pallas:
        return _jnp_reference(time, dim)

    half_dim = dim // 2
    scale = math.log(10000.0) / (half_dim - 1)
    # Compile-time constant of `dim`; constant-folded by XLA, DMA'd once.
    freq = jnp.exp(jnp.arange(half_dim, dtype=jnp.float32) * (-scale))

    # Lane packing: fold R consecutive batch rows into one output row so the
    # kernel's last dim is >= 128. Row-major (B, dim) and (B//R, R*dim) are the
    # same memory -> the final reshape is free.
    R = 1
    if dim < 128 and (128 % dim == 0) and (B % (128 // dim) == 0):
        R = 128 // dim
    Bp = B // R
    packed_dim = R * dim

    TB = _choose_row_tile(Bp, packed_dim)
    grid = (pl.cdiv(Bp, TB),)
    time2d = time.astype(jnp.float32).reshape(Bp, R)

    cost = pl.CostEstimate(
        flops=B * half_dim,
        transcendentals=B * dim,
        bytes_accessed=4 * (B + dim + B * dim),
    )
    cparams = pltpu.CompilerParams(dimension_semantics=("parallel",))

    if R > 1:
        # Host-side tables (trace-time constants of dim / R).
        freq2 = jnp.concatenate([freq, freq]).reshape(1, dim)
        sin_mask = jnp.tile(
            jnp.concatenate([jnp.ones((half_dim,), jnp.float32),
                             jnp.zeros((half_dim,), jnp.float32)]),
            R).reshape(1, packed_dim)
        kernel = functools.partial(_sincos_select_kernel, r_fold=R)
        out_packed = pl.pallas_call(
            kernel,
            out_shape=jax.ShapeDtypeStruct((Bp, packed_dim), jnp.float32),
            grid_spec=pltpu.PrefetchScalarGridSpec(
                num_scalar_prefetch=0,
                grid=grid,
                in_specs=[
                    pl.BlockSpec((TB, R), lambda i: (i, 0)),            # time rows
                    pl.BlockSpec((1, dim), lambda i: (0, 0)),           # [freq|freq]
                    pl.BlockSpec((1, packed_dim), lambda i: (0, 0)),    # sin mask
                ],
                out_specs=pl.BlockSpec((TB, packed_dim), lambda i: (i, 0)),
            ),
            compiler_params=cparams,
            cost_estimate=cost,
        )(time2d, freq2, sin_mask)
    else:
        freq1 = freq.reshape(1, half_dim)
        out_packed = pl.pallas_call(
            _sincos_concat_kernel,
            out_shape=jax.ShapeDtypeStruct((Bp, packed_dim), jnp.float32),
            grid_spec=pltpu.PrefetchScalarGridSpec(
                num_scalar_prefetch=0,
                grid=grid,
                in_specs=[
                    pl.BlockSpec((TB, 1), lambda i: (i, 0)),            # time rows
                    pl.BlockSpec((1, half_dim), lambda i: (0, 0)),      # freq table
                ],
                out_specs=pl.BlockSpec((TB, packed_dim), lambda i: (i, 0)),
            ),
            compiler_params=cparams,
            cost_estimate=cost,
        )(time2d, freq1)

    return out_packed.reshape(B, dim)


def _jnp_reference(time: jax.Array, dim: int) -> jax.Array:
    # Pure-JAX port of the PyTorch forward (also the small-shape fast path).
    half_dim = dim // 2
    emb = math.log(10000.0) / (half_dim - 1)
    emb = jnp.exp(jnp.arange(half_dim, dtype=jnp.float32) * -emb)
    emb = time.astype(jnp.float32)[:, None] * emb[None, :]
    return jnp.concatenate([jnp.sin(emb), jnp.cos(emb)], axis=-1)


if __name__ == "__main__":
    key = jax.random.PRNGKey(0)
    B, dim = 8, 64
    # typical diffusion timestep values
    time = jax.random.uniform(key, (B,), dtype=jnp.float32) * 1000.0

    out = sinusoidal_position_embeddings(time, dim, use_pallas=True)
    out = jax.block_until_ready(out)
    ref = _jnp_reference(time, dim)
    assert out.shape == (B, dim)
    assert out.dtype == jnp.float32
    assert jnp.allclose(out, ref, atol=1e-5, rtol=1e-5)

    # Also exercise the dim >= 128 (no lane-folding) kernel path.
    B2, dim2 = 16, 256
    time2 = jax.random.uniform(jax.random.PRNGKey(1), (B2,), dtype=jnp.float32) * 1000.0
    out2 = jax.block_until_ready(
        sinusoidal_position_embeddings(time2, dim2, use_pallas=True))
    assert jnp.allclose(out2, _jnp_reference(time2, dim2), atol=1e-5, rtol=1e-5)

    print("KERNEL_OK")
</pallas_src>

<mosaic_0001>
module attributes {stable_mosaic.version = 11 : i64} {
  func.func @_sincos_select_kernel(%arg0: i32, %arg1: memref<4x2xf32, #tpu.memory_space<vmem>>, %arg2: memref<1x64xf32, #tpu.memory_space<vmem>>, %arg3: memref<1x128xf32, #tpu.memory_space<vmem>>, %arg4: memref<4x128xf32, #tpu.memory_space<vmem>>) attributes {dimension_semantics = [#tpu.dimension_semantics<parallel>], iteration_bounds = array<i64: 1>, scalar_prefetch = 0 : i64, scratch_operands = 0 : i64, tpu.core_type = #tpu.core_type<tc>, window_params = [{transform_indices = @transform_0, window_bounds = array<i64: 4, 2>}, {pipeline_mode = #tpu.pipeline_mode<synchronous>, transform_indices = @transform_1, window_bounds = array<i64: 1, 64>}, {pipeline_mode = #tpu.pipeline_mode<synchronous>, transform_indices = @transform_2, window_bounds = array<i64: 1, 128>}, {transform_indices = @transform_3, window_bounds = array<i64: 4, 128>}]} {
    %c0 = arith.constant 0 : index
    %c0_0 = arith.constant 0 : index
    %0 = vector.load %arg1[%c0, %c0_0] : memref<4x2xf32, #tpu.memory_space<vmem>>, vector<4x2xf32>
    %c0_1 = arith.constant 0 : index
    %c0_2 = arith.constant 0 : index
    %1 = vector.load %arg2[%c0_1, %c0_2] : memref<1x64xf32, #tpu.memory_space<vmem>>, vector<1x64xf32>
    %2 = vector.extract_strided_slice %0 {offsets = [0, 0], sizes = [4, 1], strides = [1, 1]} : vector<4x2xf32> to vector<4x1xf32>
    %3 = vector.broadcast %2 : vector<4x1xf32> to vector<4x64xf32>
    %4 = vector.broadcast %1 : vector<1x64xf32> to vector<4x64xf32>
    %5 = arith.mulf %3, %4 : vector<4x64xf32>
    %6 = vector.extract_strided_slice %0 {offsets = [0, 1], sizes = [4, 1], strides = [1, 1]} : vector<4x2xf32> to vector<4x1xf32>
    %7 = vector.broadcast %6 : vector<4x1xf32> to vector<4x64xf32>
    %8 = vector.broadcast %1 : vector<1x64xf32> to vector<4x64xf32>
    %9 = arith.mulf %7, %8 : vector<4x64xf32>
    %10 = tpu.concatenate %5, %9 in 1 : vector<4x64xf32>, vector<4x64xf32> -> vector<4x128xf32>
    %11 = math.sin %10 : vector<4x128xf32>
    %12 = math.cos %10 : vector<4x128xf32>
    %c0_3 = arith.constant 0 : index
    %c0_4 = arith.constant 0 : index
    %13 = vector.load %arg3[%c0_3, %c0_4] : memref<1x128xf32, #tpu.memory_space<vmem>>, vector<1x128xf32>
    %cst = arith.constant 5.000000e-01 : f32
    %14 = vector.broadcast %cst : f32 to vector<1x128xf32>
    %15 = arith.cmpf ogt, %13, %14 : vector<1x128xf32>
    %16 = vector.shape_cast %15 : vector<1x128xi1> to vector<1x128xi1>
    %17 = vector.broadcast %16 : vector<1x128xi1> to vector<4x128xi1>
    %18 = arith.select %17, %11, %12 : vector<4x128xi1>, vector<4x128xf32>
    %c0_5 = arith.constant 0 : index
    %c0_6 = arith.constant 0 : index
    %19 = vector.load %arg4[%c0_5, %c0_6] : memref<4x128xf32, #tpu.memory_space<vmem>>, vector<4x128xf32>
    tpu.vector_store %arg4[%c0_5, %c0_6], %18 {strides = array<i32>} : memref<4x128xf32, #tpu.memory_space<vmem>>, vector<4x128xf32>,
    return
  }
  func.func @transform_0(%arg0: i32) -> (i32, i32) {
    %c0_i32 = arith.constant 0 : i32
    %c0_i32_0 = arith.constant 0 : i32
    return %arg0, %c0_i32 : i32, i32
  }
  func.func @transform_1(%arg0: i32) -> (i32, i32) {
    %c0_i32 = arith.constant 0 : i32
    %c0_i32_0 = arith.constant 0 : i32
    %c0_i32_1 = arith.constant 0 : i32
    return %c0_i32, %c0_i32_0 : i32, i32
  }
  func.func @transform_2(%arg0: i32) -> (i32, i32) {
    %c0_i32 = arith.constant 0 : i32
    %c0_i32_0 = arith.constant 0 : i32
    %c0_i32_1 = arith.constant 0 : i32
    return %c0_i32, %c0_i32_0 : i32, i32
  }
  func.func @transform_3(%arg0: i32) -> (i32, i32) {
    %c0_i32 = arith.constant 0 : i32
    %c0_i32_0 = arith.constant 0 : i32
    return %arg0, %c0_i32 : i32, i32
  }
}

</mosaic_0001>

<bundles_post_ra>
// kernel: tpu_custom_call.1
= control target key start
LH: loop header
LB: loop body
LE: loop exit
PB: predicated region body
PF: predicated region fallthrough
CT: control target
= control target key end

     0   :  { %v323_v1 = vmov 1   ;;  %s389_s0 = inlined_call_operand.vmem [shape: f32[4,2], index: 0, kind: input, shape index: {}]   ;;  %s390_s1 = inlined_call_operand.vmem [shape: f32[1,64], index: 1, kind: input, shape index: {}]   ;;  %s391_s2 = inlined_call_operand.vmem [shape: f32[1,128], index: 2, kind: input, shape index: {}]   ;;  %s392_s3 = inlined_call_operand.hbm [shape: f32[4,128], index: 3, kind: output, shape index: {}]  }
   0x1   :  { %v15_v0 = vld [vmem:[%s389_s0] sm:$0xf]  ;;  %294 = vset.pattern.permute.xlu0 %v323_v1 }
   0x2   :  { %8 = vsyncpa [#allocation3], 0  ;;  %30 = vperm.xlu0 %294, %v15_v0   ;;  %v324_v2 = vmov 0   ;;  %v271_v3 = vld [vmem:[%s390_s1] ss:$0 sm:$0xff]  ;;  %s325_s16 = smov 64  }
   0x3   :  { %vm38_vm0 = vcmask 523264   ;;  %v326_v20 = vmov 683565275   ;;  %v327_v22 = vmov 2475754826  }
   0x4   :  { %v328_v25 = vmov 2131351028   ;;  %v329_v28 = vmov 2102212464   ;;  %v330_v31 = vmov 920167782  }
   0x5   :  { %v331_v34 = vmov 1326507024  }
   0x6   :  { %295 = vset.pattern.permute.xlu0 %v324_v2 }
   0x7   :  { %19 = vperm.xlu0 %295, %v15_v0  }
   0xb   :  { %296 = vset.pattern.permute.xlu0 %v323_v1 }
  0x7d   :  { %v31_v4 = vpop.permute.xlu0 %30 }
  0x7e   :  { %v33_v5 = vmul.f32 %v271_v3, %v31_v4 }
  0x80   :  { %35 = vrot.lane.b32.xlu1 %v33_v5, %s325_s16 }
  0x82   :  { %v20_v6 = vpop.permute.xlu0 %19 }
  0x83   :  { %v28_v7 = vmul.f32 %v271_v3, %v20_v6 }
  0xf2   :  { %v36_v8 = vpop.permute.xlu1 %35 }
  0xf3   :  { %v360_v9 = vsel %vm38_vm0, %v28_v7, %v36_v8 }
  0xf4   :  { %v43_v10 = vand.u32 2139095040, %v360_v9  ;;  %v40_v14 = vand.u32 2147483647, %v360_v9  ;;  %vm42_vm8 = vcmp.lt.s32.totalorder %v360_v9, 0 }
  0xf6   :  { %v44_v11 = vshrl.u32 %v43_v10, 23  ;;  %v47_v17 = vand.u32 8388607, %v40_v14  ;;  %vm41_vm9 = vcmp.le.f32.partialorder %v40_v14, 0.7853982 }
  0xf8   :  { %v272_v12 = vadd.s32 4294967169, %v44_v11  ;;  %v48_v36 = vor.u32 8388608, %v47_v17 }
  0xfa   :  { %v50_v13 = vadd.s32 1, %v272_v12  ;;  %v88_v50 = vshll.u32 %v48_v36, 8 }
  0xfc   :  { %vm51_vm1 = vcmp.gt.s32.totalorder %v50_v13, 0 }
  0xfd   :  { %v52_v15 = vsel %vm51_vm1, %v50_v13, 0 }
  0xfe   :  { %v54_v16 = vand.u32 31, %v52_v15  ;;  %v53_v19 = vshrl.u32 %v52_v15, 5 }
 0x100   :  { %v55_v18 = vsub.s32 32, %v54_v16  ;;  %v57_v21 = vshll.u32 %v326_v20, %v54_v16  ;;  %v60_v23 = vshll.u32 %v327_v22, %v54_v16  ;;  %v63_v27 = vshll.u32 %v328_v25, %v54_v16 }
 0x101   :  { %v66_v30 = vshll.u32 %v329_v28, %v54_v16  ;;  %v69_v33 = vshll.u32 %v330_v31, %v54_v16  ;;  %vm72_vm2 = vcmp.lt.s32.totalorder %v53_v19, 1  ;;  %vm75_vm3 = vcmp.lt.s32.totalorder %v53_v19, 4 }
 0x102   :  { %v58_v24 = vshrl.u32 %v327_v22, %v55_v18  ;;  %v61_v26 = vshrl.u32 %v328_v25, %v55_v18  ;;  %v64_v29 = vshrl.u32 %v329_v28, %v55_v18  ;;  %v67_v32 = vshrl.u32 %v330_v31, %v55_v18 }
 0x103   :  { %v70_v35 = vshrl.u32 %v331_v34, %v55_v18  ;;  %v56_v45 = vshrl.u32 %v326_v20, %v55_v18  ;;  %vm74_vm4 = vcmp.lt.s32.totalorder %v53_v19, 3  ;;  %vm73_vm5 = vcmp.lt.s32.totalorder %v53_v19, 2 }
 0x104   :  { %v59_v37 = vor.u32 %v58_v24, %v57_v21  ;;  %v62_v38 = vor.u32 %v61_v26, %v60_v23  ;;  %v65_v39 = vor.u32 %v64_v29, %v63_v27  ;;  %v68_v40 = vor.u32 %v67_v32, %v66_v30  ;;  %v247_v30 = vld [vmem:[%s391_s2] sm:$0x1]  ;;  %s332_s2 = smov [#allocation2]  }
 0x105   :  { %v71_v41 = vor.u32 %v70_v35, %v69_v33  ;;  %v250_v27 = vlaneseq  ;;  %vm248_vm10 = vcmp.gt.f32.partialorder %v247_v30, 0.5  ;;  %s263_s17 = sshll.u32 %s332_s2, 4  ;;  %s264_s17 = int_to_ptr.vmem [resolvable:$true] %s263_s17 }
 0x106   :  { %v77_v42 = vsel %vm75_vm3, %v65_v39, 2102212464  ;;  %v80_v43 = vsel %vm72_vm2, %v59_v37, %v62_v38  ;;  %v84_v44 = vsel %vm72_vm2, %v62_v38, %v65_v39  ;;  %v81_v46 = vsel %vm75_vm3, %v68_v40, 920167782  ;;  %s301_s18 = scalar_lea.vmem %s264_s17, 64  ;;  %p306_p1 = scmp.lt.s32.totalorder %s264_s17, %s264_s17 }
 0x107   :  { %v85_v47 = vsel %vm75_vm3, %v71_v41, 1326507024  ;;  %v82_v48 = vsel %vm74_vm4, %v65_v39, %v81_v46  ;;  %v76_v51 = vsel %vm72_vm2, %v56_v45, %v59_v37  ;;  %v78_v52 = vsel %vm74_vm4, %v62_v38, %v77_v42  ;;  %p302_p0 = scmp.ne.s32.totalorder %s264_s17, %s301_s18  ;;  %p307_p2 = scmp.lt.s32.totalorder %s301_s18, %s301_s18 }
 0x108   :  { %v86_v49 = vsel %vm74_vm4, %v68_v40, %v85_v47  ;;  %v83_v53 = vsel %vm73_vm5, %v80_v43, %v82_v48  ;;  %v79_v59 = vsel %vm73_vm5, %v76_v51, %v78_v52  ;;  %v251_v31 = vshrl.u32 %v250_v27, 7 }
 0x109   :  { %v87_v54 = vsel %vm73_vm5, %v84_v44, %v86_v49  ;;  %v369_v57 = vmul.u32.u64.low %v88_v50, %v83_v53  ;;  %v370_v58 = vmul.u32.u64.high %v88_v50, %v83_v53, %v369_v57  ;;  %v95_v61 = vmul.u32 %v88_v50, %v79_v59  ;;  %p308_p3 = por %p307_p2, %p306_p1 }
 0x10a   :  { %v366_v55 = vmul.u32.u64.low %v88_v50, %v87_v54  ;;  %v367_v56 = vmul.u32.u64.high %v88_v50, %v87_v54, %v366_v55  ;;  %v252_v33 = vsub.s32 0, %v251_v31  ;;  %v249_v35 = vsel %vm248_vm10, 1, %v324_v2 }
 0x10b   :  { %v98_v60 = vadd.s32 1, %v370_v58  ;;  %vm132_vm2 = vweird.f32 %v360_v9  ;;  %p309_p4 = pnand %p308_p3, %p302_p0 }
 0x10c   :  { %vm97_vm6 = vc.u32 %v367_v56, %v369_v57  ;;  %v96_v11 = vadd.s32 %v369_v57, %v367_v56  ;;  %v253_v36 = vrot.slane %v249_v35, %v252_v33 }
 0x10d   :  { %v99_v62 = vsel %vm97_vm6, %v98_v60, %v370_v58 }
 0x10e   :  { %v100_v63 = vadd.s32 %v99_v62, %v95_v61  ;;  %vm254_vm13 = vcmp.eq.s32.totalorder %v253_v36, 1 }
 0x110   :  { %v101_v0 = vadd.s32 536870912, %v100_v63 }
 0x112   :  { %v102_v1 = vshrl.u32 %v101_v0, 30 }
 0x114   :  { %v103_v3 = vshll.u32 %v102_v1, 30  ;;  %v126_v25 = vsub.s32 4, %v102_v1 }
 0x116   :  { %v104_v4 = vsub.s32 %v100_v63, %v103_v3  ;;  %v127_v29 = vsel %vm42_vm8, %v126_v25, %v102_v1 }
 0x117   :  { %v129_v32 = vsel %vm41_vm9, 0, %v127_v29 }
 0x118   :  { %v106_v5 = vsub.s32 0, %v104_v4  ;;  %v133_v34 = vadd.s32 3, %v129_v32  ;;  %v237_v37 = vand.u32 3, %v129_v32 }
 0x11a   :  { %v273_v6 = vmin.u32 %v106_v5, %v104_v4  ;;  %v134_v14 = vand.u32 3, %v133_v34  ;;  %vm242_vm12 = vcmp.eq.s32.totalorder %v237_v37, 2  ;;  %vm239_vm15 = vcmp.eq.s32.totalorder %v237_v37, 0 }
 0x11b   :  { %vm238_vm1 = vcmp.lt.s32.totalorder %v237_v37, 2 }
 0x11c   :  { %v108_v7 = vclz %v273_v6  ;;  %vm139_vm11 = vcmp.eq.s32.totalorder %v134_v14, 2  ;;  %vm136_vm14 = vcmp.eq.s32.totalorder %v134_v14, 0  ;;  %vm135_vm0 = vcmp.lt.s32.totalorder %v134_v14, 2 }
 0x11e   :  { %v274_v8 = vadd.s32 4294967294, %v108_v7 }
 0x120   :  { %vm275_vm7 = vcmp.lt.s32.totalorder %v274_v8, 0 }
 0x121   :  { %v111_v10 = vsel %vm275_vm7, 0, %v274_v8 }
 0x122   :  { %v112_v12 = vsub.s32 32, %v111_v10  ;;  %v116_v13 = vsub.s32 4294967266, %v111_v10  ;;  %v113_v15 = vshll.u32 %v104_v4, %v111_v10 }
 0x124   :  { %v114_v16 = vshrl.u32 %v96_v11, %v112_v12  ;;  %v117_v17 = vadd.s32 127, %v116_v13 }
 0x126   :  { %v115_v18 = vor.u32 %v114_v16, %v113_v15  ;;  %v118_v19 = vshll.u32 %v117_v17, 23 }
 0x128   :  { %v119_v20 = vor.u32 4788187, %v118_v19  ;;  %v122_v22 = vcvt.s32.f32 %v115_v18 }
 0x12a   :  { %v120_v21 = vand.u32 2147483647, %v119_v20 }
 0x12c   :  { %v123_v23 = vmul.f32 %v122_v22, %v120_v21 }
 0x12e   :  { %v124_v24 = vxor.u32 2147483648, %v123_v23 }
 0x130   :  { %v125_v26 = vsel %vm42_vm8, %v124_v24, %v123_v23 }
 0x131   :  { %v128_v28 = vsel %vm41_vm9, %v360_v9, %v125_v26 }
 0x132   :  { %297 = vcosq.f32 %v128_v28 }
 0x133   :  { %299 = vsinq.f32 %v128_v28 }
 0x13f   :  { %v298_v38 = vpop.eup %297 }
 0x140   :  { %v300_v39 = vpop.eup %299  ;;  %v140_v40 = vxor.u32 2147483648, %v298_v38 }
 0x141   :  { %v137_v41 = vxor.u32 2147483648, %v300_v39 }
 0x142   :  { %v141_v42 = vsel %vm139_vm11, %v140_v40, %v300_v39  ;;  %v244_v43 = vsel %vm242_vm12, %v140_v40, %v300_v39 }
 0x143   :  { %v138_v44 = vsel %vm136_vm14, %v298_v38, %v137_v41  ;;  %v241_v2 = vsel %vm239_vm15, %v298_v38, %v137_v41 }
 0x144   :  { %v142_v45 = vsel %vm135_vm0, %v138_v44, %v141_v42  ;;  %v245_v46 = vsel %vm238_vm1, %v241_v2, %v244_v43 }
 0x145   :  { %v143_v47 = vsel %vm132_vm2, nan, %v142_v45  ;;  %v246_v48 = vsel %vm132_vm2, nan, %v245_v46 }
 0x146   :  { %v255_v49 = vsel %vm254_vm13, %v143_v47, %v246_v48 }
 0x147   :  { %256 = vst [vmem:[#allocation2] sm:$0xf] %v255_v49 }
 0x148   :  { %312 = shalt.err (!%p309_p4)
}
 0x149   :  { %266 = dma.vmem_to_hbm [thread:$0]  %s264_s17, 64, %s392_s3, [#allocation3]  }
 0x14a   :  { %321 = dma.done.wait [#allocation3], 64  }
 0x14b   :  { %322 = vsyncadd [#allocation3], 4294967232 }
 0x14c   :  { %270 = vsyncpa [#allocation3], 1 }

</bundles_post_ra>
